<compile_context>
chip_gen: v6e
topology: v6e:2x2x1
jax: 0.10.0
libtpu: 0.0.40
codegen_flags: <defaults>
</compile_context>

<pallas_src>
import functools

import jax
import jax.numpy as jnp
from jax.experimental import pallas as pl
from jax.experimental.pallas import tpu as pltpu


# ----------------------------------------------------------------------------
# Helpers
# ----------------------------------------------------------------------------
def _dilated_tap_matmul(src_ref, w_ref, *, K, dilation, TL, fold):
    """sum_k  src[k*dilation : k*dilation + TL, :] @ W_k  with f32 accumulation.

    `w_ref` holds the taps stacked along the contraction dim: (K*C, Cout).
    If `fold`, the K shifted views are concatenated along lanes and contracted
    in a single deep matmul (used when C is a multiple of 128, where the MXU
    actually benefits and the lane concat is natively aligned).
    """
    if fold:
        xcat = jnp.concatenate(
            [src_ref[k * dilation:k * dilation + TL, :] for k in range(K)],
            axis=-1)
        return jnp.dot(xcat, w_ref[...], preferred_element_type=jnp.float32)

    C = src_ref.shape[1]
    acc = jnp.dot(src_ref[0:TL, :], w_ref[0:C, :],
                  preferred_element_type=jnp.float32)
    for k in range(1, K):
        acc += jnp.dot(src_ref[k * dilation:k * dilation + TL, :],
                       w_ref[k * C:(k + 1) * C, :],
                       preferred_element_type=jnp.float32)
    return acc


# ----------------------------------------------------------------------------
# Fused kernel: conv1+ReLU (VMEM scratch) -> conv2+ReLU -> +residual -> ReLU
#   refs (has_downsample=True):
#     x_ref (1,TL,Cin), w1_ref (K*Cin,Cout), b1_ref (1,Cout),
#     w2_ref (K*Cout,Cout), b2_ref (1,Cout), wd_ref (Cin,Cout), bd_ref (1,Cout),
#     o_ref (1,TL,Cout), xs_ref (pad+TL,Cin) scratch, hs_ref (pad+TL,Cout) scratch
# ----------------------------------------------------------------------------
def _temporal_block_kernel(*refs, K, dilation, pad, TL,
                           fold1, fold2, has_downsample):
    if has_downsample:
        (x_ref, w1_ref, b1_ref, w2_ref, b2_ref, wd_ref, bd_ref,
         o_ref, xs_ref, hs_ref) = refs
    else:
        (x_ref, w1_ref, b1_ref, w2_ref, b2_ref,
         o_ref, xs_ref, hs_ref) = refs
        wd_ref = bd_ref = None

    l = pl.program_id(1)

    if pad > 0:
        @pl.when(l == 0)
        def _():  # first L-tile of this batch row: causal zero padding
            xs_ref[:pad, :] = jnp.zeros((pad, xs_ref.shape[1]), xs_ref.dtype)
            hs_ref[:pad, :] = jnp.zeros((pad, hs_ref.shape[1]), hs_ref.dtype)

        @pl.when(l > 0)
        def _():  # carry the last `pad` rows of x / h1 from the previous tile
            xs_ref[:pad, :] = xs_ref[TL:TL + pad, :]
            hs_ref[:pad, :] = hs_ref[TL:TL + pad, :]

    x = x_ref[0]                                         # (TL, Cin)
    xs_ref[pad:pad + TL, :] = x.astype(xs_ref.dtype)

    # ---- conv1 + chomp + ReLU (dropout = identity) ----
    h = _dilated_tap_matmul(xs_ref, w1_ref, K=K, dilation=dilation, TL=TL,
                            fold=fold1)
    h = jnp.maximum(h + b1_ref[...], 0.0)                # (TL, Cout) f32
    hs_ref[pad:pad + TL, :] = h.astype(hs_ref.dtype)

    # ---- conv2 + chomp + ReLU ----
    y = _dilated_tap_matmul(hs_ref, w2_ref, K=K, dilation=dilation, TL=TL,
                            fold=fold2)
    y = jnp.maximum(y + b2_ref[...], 0.0)                # (TL, Cout) f32

    # ---- residual (optional 1x1 downsample) + final ReLU ----
    if has_downsample:
        res = jnp.dot(x, wd_ref[...],
                      preferred_element_type=jnp.float32) + bd_ref[...]
    else:
        res = x.astype(jnp.float32)                      # requires Cin == Cout
    o_ref[0] = jnp.maximum(y + res, 0.0).astype(o_ref.dtype)


# ----------------------------------------------------------------------------
# Wrapper
# ----------------------------------------------------------------------------
def temporal_block_forward(x_ncl, params, *, kernel_size, dilation, padding,
                           l_tile=None, compute_dtype=jnp.float32):
    """x_ncl: (N, Cin, L).  params = (w1, b1, w2, b2, wd, bd) in PyTorch layout:
    w1 (Cout,Cin,K), w2 (Cout,Cout,K), wd (Cout,Cin,1) or None."""
    w1_oik, b1, w2_oik, b2, wd_oik, bd = params
    N, Cin, L = x_ncl.shape
    K = kernel_size
    Cout = w1_oik.shape[0]
    pad = padding
    assert pad == dilation * (K - 1), \
        "residual add requires causal padding == dilation*(kernel_size-1)"
    has_downsample = wd_oik is not None
    if not has_downsample:
        assert Cin == Cout, "identity residual requires in_channels == out_channels"

    # ---- L tile choice: big enough to amortize per-step overhead, small ----
    # ---- enough to keep the f32 accumulator / blocks VMEM-resident.      ----
    if l_tile is None:
        if L <= 512:
            l_tile = L
        else:
            l_tile = L
            for t in (512, 256, 128, 64, 32, 16, 8):
                if L % t == 0:
                    l_tile = t
                    break
    assert L % l_tile == 0, "l_tile must divide L"
    TL = l_tile
    n_l = L // TL

    # ---- layout glue (PyTorch OIK -> matmul-ready), dtype casts ----
    x = jnp.transpose(x_ncl, (0, 2, 1)).astype(compute_dtype)            # (N,L,Cin)
    w1 = jnp.transpose(w1_oik, (2, 1, 0)).reshape(K * Cin, Cout).astype(compute_dtype)
    w2 = jnp.transpose(w2_oik, (2, 1, 0)).reshape(K * Cout, Cout).astype(compute_dtype)
    b1r = b1.reshape(1, Cout).astype(jnp.float32)
    b2r = b2.reshape(1, Cout).astype(jnp.float32)

    in_specs = [
        pl.BlockSpec((1, TL, Cin), lambda n, l: (n, l, 0)),
        pl.BlockSpec((K * Cin, Cout), lambda n, l: (0, 0)),
        pl.BlockSpec((1, Cout), lambda n, l: (0, 0)),
        pl.BlockSpec((K * Cout, Cout), lambda n, l: (0, 0)),
        pl.BlockSpec((1, Cout), lambda n, l: (0, 0)),
    ]
    args = [x, w1, b1r, w2, b2r]
    if has_downsample:
        wd = jnp.transpose(wd_oik[:, :, 0], (1, 0)).astype(compute_dtype)  # (Cin,Cout)
        bdr = bd.reshape(1, Cout).astype(jnp.float32)
        in_specs += [pl.BlockSpec((Cin, Cout), lambda n, l: (0, 0)),
                     pl.BlockSpec((1, Cout), lambda n, l: (0, 0))]
        args += [wd, bdr]

    # ---- VMEM budget (double-buffered blocks + weights + scratch), with ----
    # ---- headroom; keeps v7x (64 MiB) and v5e (16 MiB scoped) happy.    ----
    isz = jnp.dtype(compute_dtype).itemsize
    osz = jnp.dtype(x_ncl.dtype).itemsize
    est = (2 * TL * Cin * isz + 2 * TL * Cout * osz
           + 2 * (K * Cin * Cout + K * Cout * Cout + Cin * Cout) * isz
           + 8 * Cout * 4
           + (pad + TL) * (Cin + Cout) * isz)
    vmem_limit = int(min(64 << 20, max(16 << 20, 4 * est)))

    kernel = functools.partial(
        _temporal_block_kernel, K=K, dilation=dilation, pad=pad, TL=TL,
        fold1=(Cin % 128 == 0), fold2=(Cout % 128 == 0),
        has_downsample=has_downsample)

    out = pl.pallas_call(
        kernel,
        out_shape=jax.ShapeDtypeStruct((N, L, Cout), x_ncl.dtype),
        grid_spec=pltpu.PrefetchScalarGridSpec(
            num_scalar_prefetch=0,
            grid=(N, n_l),
            in_specs=in_specs,
            out_specs=pl.BlockSpec((1, TL, Cout), lambda n, l: (n, l, 0)),
            scratch_shapes=[pltpu.VMEM((pad + TL, Cin), compute_dtype),
                            pltpu.VMEM((pad + TL, Cout), compute_dtype)],
        ),
        compiler_params=pltpu.CompilerParams(
            dimension_semantics=("parallel", "arbitrary"),
            vmem_limit_bytes=vmem_limit),
    )(*args)

    return jnp.transpose(out, (0, 2, 1))                                 # (N,Cout,L)


# ----------------------------------------------------------------------------
# Pure-JAX reference (lax.conv) for correctness check
# ----------------------------------------------------------------------------
def _ref_forward(x, w1_oik, b1, w2_oik, b2, wd_oik, bd, *, K, dilation, padding):
    dn = ("NCH", "OIH", "NCH")
    y = jax.lax.conv_general_dilated(x, w1_oik, (1,), [(padding, padding)],
                                     rhs_dilation=(dilation,),
                                     dimension_numbers=dn) + b1[None, :, None]
    y = jnp.maximum(y[:, :, :-padding], 0.0)
    y = jax.lax.conv_general_dilated(y, w2_oik, (1,), [(padding, padding)],
                                     rhs_dilation=(dilation,),
                                     dimension_numbers=dn) + b2[None, :, None]
    y = jnp.maximum(y[:, :, :-padding], 0.0)
    if wd_oik is not None:
        res = jax.lax.conv_general_dilated(x, wd_oik, (1,), [(0, 0)],
                                           dimension_numbers=dn) + bd[None, :, None]
    else:
        res = x
    return jnp.maximum(y + res, 0.0)


if __name__ == "__main__":
    def run_case(key, *, N, Cin, Cout, L, K, dilation, l_tile, with_downsample):
        pad = (K - 1) * dilation
        ks = jax.random.split(key, 7)
        x = jax.random.normal(ks[0], (N, Cin, L), jnp.float32)
        w1 = 0.3 * jax.random.normal(ks[1], (Cout, Cin, K), jnp.float32)    # OIK
        b1 = 0.1 * jax.random.normal(ks[2], (Cout,), jnp.float32)
        w2 = 0.3 * jax.random.normal(ks[3], (Cout, Cout, K), jnp.float32)
        b2 = 0.1 * jax.random.normal(ks[4], (Cout,), jnp.float32)
        if with_downsample:
            wd = 0.3 * jax.random.normal(ks[5], (Cout, Cin, 1), jnp.float32)
            bd = 0.1 * jax.random.normal(ks[6], (Cout,), jnp.float32)
        else:
            wd = bd = None

        out = temporal_block_forward(
            x, (w1, b1, w2, b2, wd, bd),
            kernel_size=K, dilation=dilation, padding=pad, l_tile=l_tile)
        out = jax.block_until_ready(out)

        ref = _ref_forward(x, w1, b1, w2, b2, wd, bd,
                           K=K, dilation=dilation, padding=pad)
        assert out.shape == (N, Cout, L)
        assert jnp.allclose(out, ref, atol=1e-4, rtol=1e-4), \
            f"mismatch vs reference (downsample={with_downsample})"

    key = jax.random.PRNGKey(0)
    k_a, k_b = jax.random.split(key)

    # Case A: Cin != Cout -> 1x1 downsample residual; 2 L-tiles exercise the
    # causal carry across the "arbitrary" L grid axis.
    run_case(k_a, N=2, Cin=4, Cout=8, L=16, K=3, dilation=2, l_tile=8,
             with_downsample=True)

    # Case B: Cin == Cout -> identity residual (no downsample DMAs).
    run_case(k_b, N=2, Cin=8, Cout=8, L=16, K=3, dilation=1, l_tile=8,
             with_downsample=False)

    print("KERNEL_OK")
</pallas_src>

<mosaic_0001>
module attributes {stable_mosaic.version = 11 : i64} {
  func.func @_temporal_block_kernel(%arg0: i32, %arg1: i32, %arg2: memref<1x8x4xf32, #tpu.memory_space<vmem>>, %arg3: memref<12x8xf32, #tpu.memory_space<vmem>>, %arg4: memref<1x8xf32, #tpu.memory_space<vmem>>, %arg5: memref<24x8xf32, #tpu.memory_space<vmem>>, %arg6: memref<1x8xf32, #tpu.memory_space<vmem>>, %arg7: memref<4x8xf32, #tpu.memory_space<vmem>>, %arg8: memref<1x8xf32, #tpu.memory_space<vmem>>, %arg9: memref<1x8x8xf32, #tpu.memory_space<vmem>>, %arg10: memref<12x4xf32, #tpu.memory_space<vmem>>, %arg11: memref<12x8xf32, #tpu.memory_space<vmem>>) attributes {dimension_semantics = [#tpu.dimension_semantics<parallel>, #tpu.dimension_semantics<arbitrary>], iteration_bounds = array<i64: 2, 2>, scalar_prefetch = 0 : i64, scratch_operands = 2 : i64, tpu.core_type = #tpu.core_type<tc>, window_params = [{transform_indices = @transform_0, window_bounds = array<i64: 1, 8, 4>}, {pipeline_mode = #tpu.pipeline_mode<synchronous>, transform_indices = @transform_1, window_bounds = array<i64: 12, 8>}, {pipeline_mode = #tpu.pipeline_mode<synchronous>, transform_indices = @transform_2, window_bounds = array<i64: 1, 8>}, {pipeline_mode = #tpu.pipeline_mode<synchronous>, transform_indices = @transform_3, window_bounds = array<i64: 24, 8>}, {pipeline_mode = #tpu.pipeline_mode<synchronous>, transform_indices = @transform_4, window_bounds = array<i64: 1, 8>}, {pipeline_mode = #tpu.pipeline_mode<synchronous>, transform_indices = @transform_5, window_bounds = array<i64: 4, 8>}, {pipeline_mode = #tpu.pipeline_mode<synchronous>, transform_indices = @transform_6, window_bounds = array<i64: 1, 8>}, {transform_indices = @transform_7, window_bounds = array<i64: 1, 8, 8>}]} {
    %c0_i32 = arith.constant 0 : i32
    %0 = arith.cmpi eq, %arg1, %c0_i32 : i32
    %1 = arith.extui %0 : i1 to i32
    %c0_i32_0 = arith.constant 0 : i32
    %2 = arith.cmpi ne, %1, %c0_i32_0 : i32
    scf.if %2 {
      %cst_49 = arith.constant 0.000000e+00 : f32
      %53 = vector.broadcast %cst_49 : f32 to vector<4x4xf32>
      %c0_50 = arith.constant 0 : index
      %c0_51 = arith.constant 0 : index
      %54 = vector.load %arg10[%c0_50, %c0_51] : memref<12x4xf32, #tpu.memory_space<vmem>>, vector<4x4xf32>
      tpu.vector_store %arg10[%c0_50, %c0_51], %53 {strides = array<i32>} : memref<12x4xf32, #tpu.memory_space<vmem>>, vector<4x4xf32>,
      %cst_52 = arith.constant 0.000000e+00 : f32
      %55 = vector.broadcast %cst_52 : f32 to vector<4x8xf32>
      %c0_53 = arith.constant 0 : index
      %c0_54 = arith.constant 0 : index
      %56 = vector.load %arg11[%c0_53, %c0_54] : memref<12x8xf32, #tpu.memory_space<vmem>>, vector<4x8xf32>
      tpu.vector_store %arg11[%c0_53, %c0_54], %55 {strides = array<i32>} : memref<12x8xf32, #tpu.memory_space<vmem>>, vector<4x8xf32>,
    } else {
    }
    %c0_i32_1 = arith.constant 0 : i32
    %3 = arith.cmpi sgt, %arg1, %c0_i32_1 : i32
    %4 = arith.extui %3 : i1 to i32
    %c0_i32_2 = arith.constant 0 : i32
    %5 = arith.cmpi ne, %4, %c0_i32_2 : i32
    scf.if %5 {
      %c8_49 = arith.constant 8 : index
      %c0_50 = arith.constant 0 : index
      %53 = vector.load %arg10[%c8_49, %c0_50] : memref<12x4xf32, #tpu.memory_space<vmem>>, vector<4x4xf32>
      %c0_51 = arith.constant 0 : index
      %c0_52 = arith.constant 0 : index
      %54 = vector.load %arg10[%c0_51, %c0_52] : memref<12x4xf32, #tpu.memory_space<vmem>>, vector<4x4xf32>
      tpu.vector_store %arg10[%c0_51, %c0_52], %53 {strides = array<i32>} : memref<12x4xf32, #tpu.memory_space<vmem>>, vector<4x4xf32>,
      %c8_53 = arith.constant 8 : index
      %c0_54 = arith.constant 0 : index
      %55 = vector.load %arg11[%c8_53, %c0_54] : memref<12x8xf32, #tpu.memory_space<vmem>>, vector<4x8xf32>
      %c0_55 = arith.constant 0 : index
      %c0_56 = arith.constant 0 : index
      %56 = vector.load %arg11[%c0_55, %c0_56] : memref<12x8xf32, #tpu.memory_space<vmem>>, vector<4x8xf32>
      tpu.vector_store %arg11[%c0_55, %c0_56], %55 {strides = array<i32>} : memref<12x8xf32, #tpu.memory_space<vmem>>, vector<4x8xf32>,
    } else {
    }
    %c0 = arith.constant 0 : index
    %c0_3 = arith.constant 0 : index
    %c0_4 = arith.constant 0 : index
    %6 = vector.load %arg2[%c0, %c0_3, %c0_4] : memref<1x8x4xf32, #tpu.memory_space<vmem>>, vector<1x8x4xf32>
    %7 = vector.shape_cast %6 : vector<1x8x4xf32> to vector<8x4xf32>
    %c4 = arith.constant 4 : index
    %c0_5 = arith.constant 0 : index
    %8 = vector.load %arg10[%c4, %c0_5] : memref<12x4xf32, #tpu.memory_space<vmem>>, vector<8x4xf32>
    tpu.vector_store %arg10[%c4, %c0_5], %7 {strides = array<i32>} : memref<12x4xf32, #tpu.memory_space<vmem>>, vector<8x4xf32>,
    %c0_6 = arith.constant 0 : index
    %c0_7 = arith.constant 0 : index
    %9 = vector.load %arg10[%c0_6, %c0_7] : memref<12x4xf32, #tpu.memory_space<vmem>>, vector<8x4xf32>
    %c0_8 = arith.constant 0 : index
    %c0_9 = arith.constant 0 : index
    %10 = vector.load %arg3[%c0_8, %c0_9] : memref<12x8xf32, #tpu.memory_space<vmem>>, vector<4x8xf32>
    %cst = arith.constant dense<0.000000e+00> : vector<8x8xf32>
    %11 = tpu.matmul %9, %10, %cst {dimension_numbers = #tpu.dot_dimension_numbers<[1], [0], [0], [1], [0, 0, 1, 1], [], []>} : vector<8x4xf32>, vector<4x8xf32>, vector<8x8xf32> -> vector<8x8xf32>
    %c2 = arith.constant 2 : index
    %c0_10 = arith.constant 0 : index
    %12 = vector.load %arg10[%c2, %c0_10] : memref<12x4xf32, #tpu.memory_space<vmem>>, vector<8x4xf32>
    %c4_11 = arith.constant 4 : index
    %c0_12 = arith.constant 0 : index
    %13 = vector.load %arg3[%c4_11, %c0_12] : memref<12x8xf32, #tpu.memory_space<vmem>>, vector<4x8xf32>
    %cst_13 = arith.constant dense<0.000000e+00> : vector<8x8xf32>
    %14 = tpu.matmul %12, %13, %cst_13 {dimension_numbers = #tpu.dot_dimension_numbers<[1], [0], [0], [1], [0, 0, 1, 1], [], []>} : vector<8x4xf32>, vector<4x8xf32>, vector<8x8xf32> -> vector<8x8xf32>
    %15 = arith.addf %11, %14 : vector<8x8xf32>
    %c4_14 = arith.constant 4 : index
    %c0_15 = arith.constant 0 : index
    %16 = vector.load %arg10[%c4_14, %c0_15] : memref<12x4xf32, #tpu.memory_space<vmem>>, vector<8x4xf32>
    %c8 = arith.constant 8 : index
    %c0_16 = arith.constant 0 : index
    %17 = vector.load %arg3[%c8, %c0_16] : memref<12x8xf32, #tpu.memory_space<vmem>>, vector<4x8xf32>
    %cst_17 = arith.constant dense<0.000000e+00> : vector<8x8xf32>
    %18 = tpu.matmul %16, %17, %cst_17 {dimension_numbers = #tpu.dot_dimension_numbers<[1], [0], [0], [1], [0, 0, 1, 1], [], []>} : vector<8x4xf32>, vector<4x8xf32>, vector<8x8xf32> -> vector<8x8xf32>
    %19 = arith.addf %15, %18 : vector<8x8xf32>
    %c0_18 = arith.constant 0 : index
    %c0_19 = arith.constant 0 : index
    %20 = vector.load %arg4[%c0_18, %c0_19] : memref<1x8xf32, #tpu.memory_space<vmem>>, vector<1x8xf32>
    %21 = vector.broadcast %20 : vector<1x8xf32> to vector<8x8xf32>
    %22 = arith.addf %19, %21 : vector<8x8xf32>
    %cst_20 = arith.constant 0.000000e+00 : f32
    %23 = vector.broadcast %cst_20 : f32 to vector<8x8xf32>
    %24 = arith.maximumf %22, %23 : vector<8x8xf32>
    %c4_21 = arith.constant 4 : index
    %c0_22 = arith.constant 0 : index
    %25 = vector.load %arg11[%c4_21, %c0_22] : memref<12x8xf32, #tpu.memory_space<vmem>>, vector<8x8xf32>
    tpu.vector_store %arg11[%c4_21, %c0_22], %24 {strides = array<i32>} : memref<12x8xf32, #tpu.memory_space<vmem>>, vector<8x8xf32>,
    %c0_23 = arith.constant 0 : index
    %c0_24 = arith.constant 0 : index
    %26 = vector.load %arg11[%c0_23, %c0_24] : memref<12x8xf32, #tpu.memory_space<vmem>>, vector<8x8xf32>
    %c0_25 = arith.constant 0 : index
    %c0_26 = arith.constant 0 : index
    %27 = vector.load %arg5[%c0_25, %c0_26] : memref<24x8xf32, #tpu.memory_space<vmem>>, vector<8x8xf32>
    %cst_27 = arith.constant dense<0.000000e+00> : vector<8x8xf32>
    %28 = tpu.matmul %26, %27, %cst_27 {dimension_numbers = #tpu.dot_dimension_numbers<[1], [0], [0], [1], [0, 0, 1, 1], [], []>} : vector<8x8xf32>, vector<8x8xf32>, vector<8x8xf32> -> vector<8x8xf32>
    %c2_28 = arith.constant 2 : index
    %c0_29 = arith.constant 0 : index
    %29 = vector.load %arg11[%c2_28, %c0_29] : memref<12x8xf32, #tpu.memory_space<vmem>>, vector<8x8xf32>
    %c8_30 = arith.constant 8 : index
    %c0_31 = arith.constant 0 : index
    %30 = vector.load %arg5[%c8_30, %c0_31] : memref<24x8xf32, #tpu.memory_space<vmem>>, vector<8x8xf32>
    %cst_32 = arith.constant dense<0.000000e+00> : vector<8x8xf32>
    %31 = tpu.matmul %29, %30, %cst_32 {dimension_numbers = #tpu.dot_dimension_numbers<[1], [0], [0], [1], [0, 0, 1, 1], [], []>} : vector<8x8xf32>, vector<8x8xf32>, vector<8x8xf32> -> vector<8x8xf32>
    %32 = arith.addf %28, %31 : vector<8x8xf32>
    %c4_33 = arith.constant 4 : index
    %c0_34 = arith.constant 0 : index
    %33 = vector.load %arg11[%c4_33, %c0_34] : memref<12x8xf32, #tpu.memory_space<vmem>>, vector<8x8xf32>
    %c16 = arith.constant 16 : index
    %c0_35 = arith.constant 0 : index
    %34 = vector.load %arg5[%c16, %c0_35] : memref<24x8xf32, #tpu.memory_space<vmem>>, vector<8x8xf32>
    %cst_36 = arith.constant dense<0.000000e+00> : vector<8x8xf32>
    %35 = tpu.matmul %33, %34, %cst_36 {dimension_numbers = #tpu.dot_dimension_numbers<[1], [0], [0], [1], [0, 0, 1, 1], [], []>} : vector<8x8xf32>, vector<8x8xf32>, vector<8x8xf32> -> vector<8x8xf32>
    %36 = arith.addf %32, %35 : vector<8x8xf32>
    %c0_37 = arith.constant 0 : index
    %c0_38 = arith.constant 0 : index
    %37 = vector.load %arg6[%c0_37, %c0_38] : memref<1x8xf32, #tpu.memory_space<vmem>>, vector<1x8xf32>
    %38 = vector.broadcast %37 : vector<1x8xf32> to vector<8x8xf32>
    %39 = arith.addf %36, %38 : vector<8x8xf32>
    %cst_39 = arith.constant 0.000000e+00 : f32
    %40 = vector.broadcast %cst_39 : f32 to vector<8x8xf32>
    %41 = arith.maximumf %39, %40 : vector<8x8xf32>
    %c0_40 = arith.constant 0 : index
    %c0_41 = arith.constant 0 : index
    %42 = vector.load %arg7[%c0_40, %c0_41] : memref<4x8xf32, #tpu.memory_space<vmem>>, vector<4x8xf32>
    %cst_42 = arith.constant dense<0.000000e+00> : vector<8x8xf32>
    %43 = tpu.matmul %7, %42, %cst_42 {dimension_numbers = #tpu.dot_dimension_numbers<[1], [0], [0], [1], [0, 0, 1, 1], [], []>} : vector<8x4xf32>, vector<4x8xf32>, vector<8x8xf32> -> vector<8x8xf32>
    %c0_43 = arith.constant 0 : index
    %c0_44 = arith.constant 0 : index
    %44 = vector.load %arg8[%c0_43, %c0_44] : memref<1x8xf32, #tpu.memory_space<vmem>>, vector<1x8xf32>
    %45 = vector.broadcast %44 : vector<1x8xf32> to vector<8x8xf32>
    %46 = arith.addf %43, %45 : vector<8x8xf32>
    %47 = arith.addf %41, %46 : vector<8x8xf32>
    %cst_45 = arith.constant 0.000000e+00 : f32
    %48 = vector.broadcast %cst_45 : f32 to vector<8x8xf32>
    %49 = arith.maximumf %47, %48 : vector<8x8xf32>
    %c0_46 = arith.constant 0 : index
    %c0_47 = arith.constant 0 : index
    %c0_48 = arith.constant 0 : index
    %50 = vector.load %arg9[%c0_46, %c0_47, %c0_48] : memref<1x8x8xf32, #tpu.memory_space<vmem>>, vector<1x8x8xf32>
    %51 = vector.shape_cast %50 : vector<1x8x8xf32> to vector<8x8xf32>
    %52 = vector.shape_cast %49 : vector<8x8xf32> to vector<1x8x8xf32>
    tpu.vector_store %arg9[%c0_46, %c0_47, %c0_48], %52 {strides = array<i32>} : memref<1x8x8xf32, #tpu.memory_space<vmem>>, vector<1x8x8xf32>,
    return
  }
  func.func @transform_0(%arg0: i32, %arg1: i32) -> (i32, i32, i32) {
    %c0_i32 = arith.constant 0 : i32
    %c0_i32_0 = arith.constant 0 : i32
    return %arg0, %arg1, %c0_i32 : i32, i32, i32
  }
  func.func @transform_1(%arg0: i32, %arg1: i32) -> (i32, i32) {
    %c0_i32 = arith.constant 0 : i32
    %c0_i32_0 = arith.constant 0 : i32
    %c0_i32_1 = arith.constant 0 : i32
    return %c0_i32, %c0_i32_0 : i32, i32
  }
  func.func @transform_2(%arg0: i32, %arg1: i32) -> (i32, i32) {
    %c0_i32 = arith.constant 0 : i32
    %c0_i32_0 = arith.constant 0 : i32
    %c0_i32_1 = arith.constant 0 : i32
    return %c0_i32, %c0_i32_0 : i32, i32
  }
  func.func @transform_3(%arg0: i32, %arg1: i32) -> (i32, i32) {
    %c0_i32 = arith.constant 0 : i32
    %c0_i32_0 = arith.constant 0 : i32
    %c0_i32_1 = arith.constant 0 : i32
    return %c0_i32, %c0_i32_0 : i32, i32
  }
  func.func @transform_4(%arg0: i32, %arg1: i32) -> (i32, i32) {
    %c0_i32 = arith.constant 0 : i32
    %c0_i32_0 = arith.constant 0 : i32
    %c0_i32_1 = arith.constant 0 : i32
    return %c0_i32, %c0_i32_0 : i32, i32
  }
  func.func @transform_5(%arg0: i32, %arg1: i32) -> (i32, i32) {
    %c0_i32 = arith.constant 0 : i32
    %c0_i32_0 = arith.constant 0 : i32
    %c0_i32_1 = arith.constant 0 : i32
    return %c0_i32, %c0_i32_0 : i32, i32
  }
  func.func @transform_6(%arg0: i32, %arg1: i32) -> (i32, i32) {
    %c0_i32 = arith.constant 0 : i32
    %c0_i32_0 = arith.constant 0 : i32
    %c0_i32_1 = arith.constant 0 : i32
    return %c0_i32, %c0_i32_0 : i32, i32
  }
  func.func @transform_7(%arg0: i32, %arg1: i32) -> (i32, i32, i32) {
    %c0_i32 = arith.constant 0 : i32
    %c0_i32_0 = arith.constant 0 : i32
    return %arg0, %arg1, %c0_i32 : i32, i32, i32
  }
}

</mosaic_0001>

<bundles_post_ra>
// kernel: tpu_custom_call.1
= control target key start
LH: loop header
LB: loop body
LE: loop exit
PB: predicated region body
PF: predicated region fallthrough
CT: control target
= control target key end

     0   :  { %s1188_s24 = smov 0   ;;  %s1190_s25 = smov 0   ;;  %s1299_s0 = inlined_call_operand.vmem [shape: f32[2,16,4], index: 0, kind: input, shape index: {}]   ;;  %s1300_s1 = inlined_call_operand.vmem [shape: f32[12,8], index: 1, kind: input, shape index: {}]   ;;  %s1301_s2 = inlined_call_operand.vmem [shape: f32[1,8], index: 2, kind: input, shape index: {}]   ;;  %s1302_s3 = inlined_call_operand.vmem [shape: f32[24,8], index: 3, kind: input, shape index: {}]   ;;  %s1303_s4 = inlined_call_operand.vmem [shape: f32[1,8], index: 4, kind: input, shape index: {}]   ;;  %s1304_s5 = inlined_call_operand.vmem [shape: f32[4,8], index: 5, kind: input, shape index: {}]   ;;  %s1305_s6 = inlined_call_operand.vmem [shape: f32[1,8], index: 6, kind: input, shape index: {}]   ;;  %s1306_s7 = inlined_call_operand.vmem [shape: f32[2,16,8], index: 7, kind: output, shape index: {}]  }
   0x1   :  { %s1192_s26 = smov 0   ;;  %s1194_s27 = smov 0  }
   0x2   :  { %s1196_s28 = smov 0  }
   0x3 LB: > { %s26_s29 = sadd.s32 1, %s1135_s26  ;;  %s29_s30 = sadd.s32 1, %s1139_s27  ;;  %s1143_s28 = sphi %s1196_s28, %s17_s28   ;;  %s1139_s27 = sphi %s1194_s27, %s1310_s27   ;;  %s1135_s26 = sphi %s1192_s26, %s1309_s26   ;;  %s1131_s25 = sphi %s1190_s25, %s1308_s25   ;;  %s1127_s24 = sphi %s1188_s24, %s1307_s24  }
   0x4   : > { %p27_p0 = scmp.ge.s32.totalorder %s26_s29, 2  ;;  %p990_p1 = scmp.ge.s32.totalorder %s1143_s28, 1 }
   0x5   : > { %p256_p2 = scmp.lt.s32.totalorder %s1143_s28, 5 }
   0x6   : > { %s1312_s29 = smov (%p27_p0, %s26_s29), 0  ;;  %s1314_s30 = smov (!%p27_p0, %s29_s30), %s1139_s27 }
   0x7   : > { %p257_p3 = pnand %p990_p1, %p256_p2  ;;  %p31_p4 = scmp.ge.s32.totalorder %s1314_s30, 2 }
   0x8   : > { %p294_p5 = scmp.lt.s32.totalorder (!%p257_p3), %s1131_s25, 1  ;;  %p296_p6 = scmp.lt.s32.totalorder (!%p257_p3), %s1127_s24, 1 }
   0x9   : > { %s1316_s30 = smov (%p31_p4, %s1314_s30), 0  ;;  %260 = sbr.rel (%p257_p3) target bundleno = 463 (0x1cf), region = 48 }
   0xa   : > { %p995_p7 = scmp.ne.s32.totalorder (!%p257_p3), %s1127_s24, 0 }
   0xe   : > { %s1318_s25 = smov (!%p294_p5, %s1131_s25), 1 }
   0xf   : > { %s297_s8 = scalar_select %p296_p6, %s1127_s24, 1 }
  0x10   : > { %s991_s9 = sshll.u32 %s1318_s25, 1  ;;  %313 = sbr.rel (%p995_p7) target bundleno = 24 (0x18), region = 52 }
  0x11   : > { %s299_s10 = sadd.s32 %s991_s9, %s297_s8 }
  0x12   : > { %s992_s11 = sshll.u32 %s299_s10, 3 }
  0x13   : > { %s301_s14 = scalar_lea.vmem %s1299_s0, %s992_s11  ;;  %s1228_s17 = scalar_lea.vmem %s1306_s7, %s992_s11 }
  0x15   : > { %vm314_vm0 = vcmask 27648   ;;  %vm316_vm1 = vcmask 60416   ;;  %v1145_v0 = vmov 0.0  }
  0x16   : > { %315 = vst.msk [vmem:[#allocation2] sm:$0xf] %vm314_vm0, %v1145_v0 }
  0x17   : > { %317 = vst.msk [vmem:[#allocation3] sm:$0xf] %vm316_vm1, %v1145_v0 }
  0x18 PF: > { %p996_p8 = scmp.le.s32.totalorder %s1127_s24, 0 }
  0x1a   : > { %321 = sbr.rel (%p996_p8) target bundleno = 34 (0x22), region = 56 }
  0x1f   : > { %v322_v1 = vld [vmem:[#allocation2 + $0x8] sm:$0xf]  ;;  %vm323_vm2 = vcmask 27648   ;;  %v325_v2 = vld [vmem:[#allocation3 + $0x8] sm:$0xf]  ;;  %vm326_vm3 = vcmask 60416  }
  0x20   : > { %324 = vst.msk [vmem:[#allocation2] sm:$0xf] %vm323_vm2, %v322_v1 }
  0x21   : > { %327 = vst.msk [vmem:[#allocation3] sm:$0xf] %vm326_vm3, %v325_v2 }
  0x22 PF: > { %v334_v3 = vld [vmem:[%s1300_s1 + $0x4] sm:$0xf]  ;;  %vm338_vm4 = vcmask 1043456   ;;  %v1146_v5 = vmov 0.0   ;;  %v332_v6 = vld [vmem:[%s1300_s1] sm:$0xf] }
  0x23   : > { %v328_v4 = vld [vmem:[%s301_s14] sm:$0xff]  ;;  %1027 = vmatprep.subr.mxu0 %v1146_v5  ;;  %1032 = vmatprep.subr.mxu1 %v1146_v5  ;;  %vm329_vm5 = vcmask 31744   ;;  %vm1147_vm6 = vmmov 0   ;;  %v489_v7 = vld [vmem:[%s1300_s1 + $0x8] sm:$0xf]  ;;  %vm576_vm7 = vcmask 64512  }
  0x24   : > { %1028 = vmatpush3.msk.msra.mxu0 %vm338_vm4, %v334_v3  ;;  %1029 = vmatprep.mubr.msk.f32.mxu0 %vm1147_vm6, %v1146_v5  ;;  %330 = vst.msk [vmem:[#allocation2 + $0x4] sm:$0xff] %vm329_vm5, %v328_v4  ;;  %v581_v11 = vld [vmem:[%s1302_s3 + $0x8] sm:$0xff]  ;;  %v579_v12 = vld [vmem:[%s1302_s3] sm:$0xff]  ;;  %v729_v24 = vld [vmem:[%s1302_s3 + $0x10] sm:$0xff] }
  0x25   : > { %1033 = vmatpush3.msk.msra.mxu1 %vm338_vm4, %v332_v6  ;;  %1034 = vmatprep.mubr.msk.f32.mxu1 %vm1147_vm6, %v1146_v5  ;;  %v1003_v19 = vld [vmem:[%s1301_s2] ss:$0 sm:$0xff] }
  0x26   : > { %1037 = vmatprep.subr.mxu0 %v1146_v5  ;;  %1042 = vmatprep.subr.mxu1 %v1146_v5  ;;  %v813_v27 = vld [vmem:[%s1304_s5] sm:$0xf] }
  0x27   : > { %v1007_v35 = vld [vmem:[%s1303_s4] ss:$0 sm:$0xff] }
  0x28   : > { %v1008_v36 = vld [vmem:[%s1305_s6] ss:$0 sm:$0xff] }
  0x2b   : > { %v333_v8 = vld [vmem:[#allocation2 + $0x2] sm:$0xff] }
  0x2c   : > { %v331_v9 = vld [vmem:[#allocation2] sm:$0xff]  ;;  %1030 = vmatmul.mubr.msk.f32.vlgmr.msra.gmra.mxu0 %vm329_vm5, %v333_v8 }
  0x2d   : > { %1035 = vmatmul.mubr.msk.f32.vlgmr.msra.gmra.mxu1 %vm329_vm5, %v331_v9  ;;  %1038 = vmatpush3.msk.msra.mxu0 %vm338_vm4, %v489_v7  ;;  %v488_v10 = vld [vmem:[#allocation2 + $0x4] sm:$0xff] }
  0x2e   : > { %1039 = vmatprep.mubr.msk.f32.mxu0 %vm1147_vm6, %v1146_v5  ;;  %1047 = vmatprep.subr.mxu0 %v1146_v5 }
  0x2f   : > { %1044 = vmatprep.mubr.msk.f32.mxu1 %vm1147_vm6, %v1146_v5  ;;  %1043 = vmatpush3.msra.mxu1 %v581_v11 }
  0x30   : > { %1040 = vmatmul.mubr.msk.f32.vlgmr.msra.gmra.mxu0 %vm329_vm5, %v488_v10  ;;  %1052 = vmatprep.subr.mxu1 %v1146_v5 }
  0x31   : > { %1049 = vmatprep.mubr.msk.f32.mxu0 %vm1147_vm6, %v1146_v5  ;;  %1048 = vmatpush3.msra.mxu0 %v579_v12 }
  0x32   : > { %1057 = vmatprep.subr.mxu0 %v1146_v5 }
  0xec   : > { %v408_v13 = vpop.f32.mrf.mxu0 }
  0xed   : > { %v484_v14 = vpop.f32.mrf.mxu1 }
  0xee   : > { %v1031_v15 = vpop.f32.mrf.mxu0  ;;  %v485_v17 = vadd.f32 %v484_v14, %v408_v13 }
  0xef   : > { %v1036_v16 = vpop.f32.mrf.mxu1 }
  0xf0   : > { %v562_v18 = vpop.f32.mrf.mxu0 }
  0xf1   : > { %v566_v20 = vadd.f32 %v562_v18, %v485_v17 }
  0xf2   : > { %v1041_v21 = vpop.f32.mrf.mxu0 }
  0xf3   : > { %v574_v22 = vadd.f32 %v1003_v19, %v566_v20 }
  0xf5   : > { %v575_v23 = vmax.f32 %v574_v22, 0.0 }
  0xf7   : > { %577 = vst.msk [vmem:[#allocation3 + $0x4] sm:$0xff] %vm576_vm7, %v575_v23 }
  0xfe   : > { %v580_v25 = vld [vmem:[#allocation3 + $0x2] sm:$0xff] }
  0xff   : > { %v578_v26 = vld [vmem:[#allocation3] sm:$0xff]  ;;  %1045 = vmatmul.mubr.msk.f32.vlgmr.msra.gmra.mxu1 %vm576_vm7, %v580_v25 }
 0x100   : > { %1050 = vmatmul.mubr.msk.f32.vlgmr.msra.gmra.mxu0 %vm576_vm7, %v578_v26  ;;  %1053 = vmatpush3.msra.mxu1 %v729_v24  ;;  %v728_v28 = vld [vmem:[#allocation3 + $0x4] sm:$0xff] }
 0x101   : > { %1054 = vmatprep.mubr.msk.f32.mxu1 %vm1147_vm6, %v1146_v5  ;;  %1058 = vmatpush3.msk.msra.mxu0 %vm338_vm4, %v813_v27 }
 0x102   : > { %1059 = vmatprep.mubr.msk.f32.mxu0 %vm1147_vm6, %v1146_v5 }
 0x103   : > { %1055 = vmatmul.mubr.msk.f32.vlgmr.msra.gmra.mxu1 %vm576_vm7, %v728_v28 }
 0x104   : > { %1060 = vmatmul.mubr.msk.f32.vlgmr.msra.gmra.mxu0 %vm329_vm5, %v328_v4 }
 0x1bf   : > { %v651_v29 = vpop.f32.mrf.mxu1 }
 0x1c0   : > { %v724_v30 = vpop.f32.mrf.mxu0 }
 0x1c1   : > { %v1046_v31 = vpop.f32.mrf.mxu1  ;;  %v725_v33 = vadd.f32 %v724_v30, %v651_v29 }
 0x1c2   : > { %v1051_v32 = vpop.f32.mrf.mxu0 }
 0x1c3   : > { %v799_v34 = vpop.f32.mrf.mxu1 }
 0x1c4   : > { %v893_v37 = vpop.f32.mrf.mxu0  ;;  %v803_v38 = vadd.f32 %v799_v34, %v725_v33 }
 0x1c5   : > { %v1056_v39 = vpop.f32.mrf.mxu1  ;;  %v894_v42 = vadd.f32 %v1008_v36, %v893_v37 }
 0x1c6   : > { %v1061_v40 = vpop.f32.mrf.mxu0  ;;  %v811_v41 = vadd.f32 %v1007_v35, %v803_v38 }
 0x1c8   : > { %v812_v43 = vmax.f32 %v811_v41, 0.0 }
 0x1ca   : > { %v897_v44 = vadd.f32 %v894_v42, %v812_v43 }
 0x1cc   : > { %v898_v45 = vmax.f32 %v897_v44, 0.0 }
 0x1ce   : > { %899 = vst.msk [vmem:[%s1228_s17] sm:$0xff] %vm576_vm7, %v898_v45 }
 0x1cf PF: > { %s17_s28 = sadd.s32 1, %s1143_s28   ;;  %s1307_s24 = smov %s1135_s26 }
 0x1d0   : > { %p14_p9 = scmp.ge.s32.totalorder %s17_s28, 6   ;;  %s1308_s25 = smov %s1139_s27 }
 0x1d1   : > { %s1309_s26 = smov %s1312_s29  ;;  %s1310_s27 = smov %s1316_s30 }
 0x1d2   :  { %16 = sbr.rel (!%p14_p9) target bundleno = 3 (0x3), region = 86 }

</bundles_post_ra>
